<compile_context>
chip_gen: v6e
topology: v6e:2x2x1
jax: 0.10.0
libtpu: 0.0.40
codegen_flags: <defaults>
</compile_context>

<pallas_src>
import functools

import jax
import jax.numpy as jnp
from jax import lax
from jax.experimental import pallas as pl
from jax.experimental.pallas import tpu as pltpu


# ----------------------------------------------------------------------------
# Block-size / VMEM-budget selection (generation-aware)
# ----------------------------------------------------------------------------
def _vmem_budget_bytes():
    """(budget for the double-buffered input block, physical VMEM capacity)."""
    cap = 64 * 1024 * 1024                      # conservative fallback (v7x)
    try:
        info = pltpu.get_tpu_info()
        cap = int(getattr(info, "vmem_capacity_bytes", cap))
    except Exception:
        pass
    budget = min(cap // 4, 32 * 1024 * 1024)    # 16 MiB on v7x, 32 MiB on v5e/v6e
    return int(budget), int(cap)


def _choose_blocks(n, c, hw, dtype_bytes, budget):
    """Pick (batch block Nb, spatial tile T, num spatial tiles, lane width)."""
    if hw <= 128:
        t = hw                                   # full dim (satisfies full-dim rule)
    else:
        per_lane = 2 * c * dtype_bytes           # double-buffered input, Nb = 1
        max_t = max(128, (budget // per_lane) // 128 * 128)
        t = min(pl.cdiv(hw, 128) * 128, max_t)   # lane-aligned; ragged tail masked
    num_t = pl.cdiv(hw, t)
    lane = 128 if t % 128 == 0 else t            # accumulator width

    # Batch-block only when one spatial tile covers all of H*W (amortizes the
    # ~0.35us per-grid-step overhead); keep >= 2 batch steps for megacore.
    nb = 1
    if num_t == 1 and n > 2:
        per_row = 2 * c * t * dtype_bytes + 2 * c * lane * 4   # input + scratch
        for d in range(n, 1, -1):
            if n % d == 0 and n // d >= 2 and d * per_row <= budget:
                nb = d
                break
    return nb, t, num_t, lane


# ----------------------------------------------------------------------------
# Fused kernel: global max+avg pool  ->  SE MLP (1x1 convs) -> Hardswish -> Sigmoid
# ----------------------------------------------------------------------------
def _channel_attention_kernel(x_ref, w1_ref, w2_ref, o_ref, accm_ref, accs_ref,
                              *, hw, tile, lane, groups, inv_hw, need_mask):
    t = pl.program_id(1)

    @pl.when(t == 0)
    def _init():
        accm_ref[...] = jnp.full(accm_ref.shape, -jnp.inf, jnp.float32)
        accs_ref[...] = jnp.zeros(accs_ref.shape, jnp.float32)

    # Fold this tile's 128-wide lane groups into the (Nb, C, lane) accumulators
    # with element-wise max/add (VPU).  Native-dtype chunks are cast to f32
    # after the VMEM load so accumulation stays in f32 for bf16 inputs.
    def fold(g, carry):
        off = pl.multiple_of(g * lane, lane)
        chunk = x_ref[:, :, pl.ds(off, lane)].astype(jnp.float32)
        if need_mask:
            col = (t * tile + off
                   + lax.broadcasted_iota(jnp.int32, chunk.shape, 2))
            valid = col < hw
            cmax = jnp.where(valid, chunk, -jnp.inf)
            csum = jnp.where(valid, chunk, 0.0)
        else:
            cmax = chunk
            csum = chunk
        accm_ref[...] = jnp.maximum(accm_ref[...], cmax)
        accs_ref[...] = accs_ref[...] + csum
        return carry

    lax.fori_loop(0, groups, fold, 0, unroll=groups <= 8)

    # Epilogue on the last spatial tile: finish the pooling reductions and run
    # the fused SE MLP + Hardswish + Sigmoid, writing the lane-dense gate row.
    @pl.when(t == pl.num_programs(1) - 1)
    def _epilogue():
        maxv = jnp.max(accm_ref[...], axis=-1)               # (Nb, C)
        avgv = jnp.sum(accs_ref[...], axis=-1) * inv_hw      # (Nb, C)
        w1 = w1_ref[...].astype(jnp.float32)                 # (Cr, C)
        w2 = w2_ref[...].astype(jnp.float32)                 # (C, Cr)

        def se(v):
            # v @ w1.T : contract the channel dims directly (no transposes).
            h = lax.dot_general(v, w1, (((1,), (1,)), ((), ())),
                                preferred_element_type=jnp.float32)
            # Hardswish: x * relu6(x + 3) / 6
            h = h * (jnp.clip(h + 3.0, 0.0, 6.0) * (1.0 / 6.0))
            return lax.dot_general(h, w2, (((1,), (1,)), ((), ())),
                                   preferred_element_type=jnp.float32)

        z = se(maxv) + se(avgv)
        gate = 1.0 / (1.0 + jnp.exp(-z))                     # Sigmoid
        o_ref[:, 0, :] = gate.astype(o_ref.dtype)


# ----------------------------------------------------------------------------
# Wrapper
# ----------------------------------------------------------------------------
def channel_attention_forward(x_nchw, params):
    """x: (N, C, H, W).  params: w1 (C//r, C, 1, 1), w2 (C, C//r, 1, 1)
    (PyTorch Conv2d weight layout, bias=False).  Returns (N, C, 1, 1)."""
    N, C, H, W = x_nchw.shape
    HW = H * W
    Cr = params["w1"].shape[0]
    w1 = params["w1"].reshape(Cr, C)          # (Cr, C) - metadata reshape only
    w2 = params["w2"].reshape(C, Cr)          # (C, Cr)

    dtype_bytes = x_nchw.dtype.itemsize
    budget, vmem_cap = _vmem_budget_bytes()
    Nb, T, num_t, lane = _choose_blocks(N, C, HW, dtype_bytes, budget)
    groups = T // lane
    need_mask = (HW % T) != 0

    # Native dtype, metadata-only reshape: no fp32 copy materialized in HBM.
    x_flat = x_nchw.reshape(N, C, HW)

    kernel = functools.partial(
        _channel_attention_kernel,
        hw=HW, tile=T, lane=lane, groups=groups,
        inv_hw=1.0 / float(HW), need_mask=need_mask)

    # TODO(synk): for N == 1 on v7x, split the H*W reduction across the two
    # TensorCores (per-core partial max/sum + tiny combine) to engage both
    # per-TC DMA paths; with N >= 2 the "parallel" batch axis already does.
    gate = pl.pallas_call(
        kernel,
        out_shape=jax.ShapeDtypeStruct((N, 1, C), x_nchw.dtype),
        grid=(N // Nb, num_t),
        in_specs=[
            pl.BlockSpec((Nb, C, T), lambda n, t: (n, 0, t)),
            pl.BlockSpec((Cr, C), lambda n, t: (0, 0)),
            pl.BlockSpec((C, Cr), lambda n, t: (0, 0)),
        ],
        out_specs=pl.BlockSpec((Nb, 1, C), lambda n, t: (n, 0, 0)),
        scratch_shapes=[pltpu.VMEM((Nb, C, lane), jnp.float32),
                        pltpu.VMEM((Nb, C, lane), jnp.float32)],
        compiler_params=pltpu.CompilerParams(
            dimension_semantics=("parallel", "arbitrary"),
            vmem_limit_bytes=int(min(vmem_cap, 2 * budget))),
    )(x_flat, w1, w2)

    return gate.reshape(N, C, 1, 1)


# ----------------------------------------------------------------------------
# Pure-JAX reference (mirrors the PyTorch module exactly)
# ----------------------------------------------------------------------------
def _reference(x, params):
    n, c, _, _ = x.shape
    cr = params["w1"].shape[0]
    w1 = params["w1"].reshape(cr, c)          # (Cr, C)
    w2 = params["w2"].reshape(c, cr)          # (C, Cr)
    maxp = jnp.max(x.astype(jnp.float32), axis=(2, 3))
    avgp = jnp.mean(x.astype(jnp.float32), axis=(2, 3))

    def se(v):
        hh = v @ w1.T
        hh = hh * jnp.clip(hh + 3.0, 0.0, 6.0) / 6.0
        return hh @ w2.T

    return jax.nn.sigmoid(se(maxp) + se(avgp)).reshape(n, c, 1, 1)


# ----------------------------------------------------------------------------
# Demo / self-test
# ----------------------------------------------------------------------------
def _run_case(key, n, c, h, w, reduction):
    kx, k1, k2 = jax.random.split(key, 3)
    cr = c // reduction
    x = jax.random.normal(kx, (n, c, h, w), jnp.float32)
    params = {
        "w1": (1.0 / jnp.sqrt(c)) * jax.random.normal(k1, (cr, c, 1, 1), jnp.float32),
        "w2": (1.0 / jnp.sqrt(cr)) * jax.random.normal(k2, (c, cr, 1, 1), jnp.float32),
    }
    fwd = jax.jit(functools.partial(channel_attention_forward, params=params))
    out = jax.block_until_ready(fwd(x))
    assert out.shape == (n, c, 1, 1), out.shape
    out32 = out.astype(jnp.float32)
    assert bool(jnp.all(jnp.isfinite(out32)))
    ref = _reference(x, params)
    err = float(jnp.max(jnp.abs(out32 - ref)))
    assert err < 5e-4, err
    return err


if __name__ == "__main__":
    key = jax.random.PRNGKey(0)
    cases = [
        (2, 64, 16, 16, 16),   # primary: lane-aligned H*W = 256
        (2, 64, 15, 15, 16),   # ragged H*W = 225 -> in-kernel mask path
        (4, 32, 8, 8, 16),     # tiny H*W, N > 2  -> batch-blocked grid
    ]
    for i, (n, c, h, w, r) in enumerate(cases):
        _run_case(jax.random.fold_in(key, i), n, c, h, w, r)
    print("KERNEL_OK")
</pallas_src>

<mosaic_0001>
module attributes {stable_mosaic.version = 11 : i64} {
  func.func @_channel_attention_kernel(%arg0: i32, %arg1: i32, %arg2: memref<1x64x256xf32, #tpu.memory_space<vmem>>, %arg3: memref<4x64xf32, #tpu.memory_space<vmem>>, %arg4: memref<64x4xf32, #tpu.memory_space<vmem>>, %arg5: memref<1x1x64xf32, #tpu.memory_space<vmem>>, %arg6: memref<1x64x128xf32, #tpu.memory_space<vmem>>, %arg7: memref<1x64x128xf32, #tpu.memory_space<vmem>>) attributes {dimension_semantics = [#tpu.dimension_semantics<parallel>, #tpu.dimension_semantics<arbitrary>], iteration_bounds = array<i64: 2, 1>, scalar_prefetch = 0 : i64, scratch_operands = 2 : i64, tpu.core_type = #tpu.core_type<tc>, window_params = [{transform_indices = @transform_0, window_bounds = array<i64: 1, 64, 256>}, {pipeline_mode = #tpu.pipeline_mode<synchronous>, transform_indices = @transform_1, window_bounds = array<i64: 4, 64>}, {pipeline_mode = #tpu.pipeline_mode<synchronous>, transform_indices = @transform_2, window_bounds = array<i64: 64, 4>}, {transform_indices = @transform_3, window_bounds = array<i64: 1, 1, 64>}]} {
    %c0_i32 = arith.constant 0 : i32
    %0 = arith.cmpi eq, %arg1, %c0_i32 : i32
    %1 = arith.extui %0 : i1 to i32
    %c0_i32_0 = arith.constant 0 : i32
    %2 = arith.cmpi ne, %1, %c0_i32_0 : i32
    scf.if %2 {
      %cst = arith.constant 0xFF800000 : f32
      %26 = vector.broadcast %cst : f32 to vector<1x64x128xf32>
      %c0_32 = arith.constant 0 : index
      %c0_33 = arith.constant 0 : index
      %c0_34 = arith.constant 0 : index
      %27 = vector.load %arg6[%c0_32, %c0_33, %c0_34] : memref<1x64x128xf32, #tpu.memory_space<vmem>>, vector<1x64x128xf32>
      tpu.vector_store %arg6[%c0_32, %c0_33, %c0_34], %26 {strides = array<i32>} : memref<1x64x128xf32, #tpu.memory_space<vmem>>, vector<1x64x128xf32>,
      %cst_35 = arith.constant 0.000000e+00 : f32
      %28 = vector.broadcast %cst_35 : f32 to vector<1x64x128xf32>
      %c0_36 = arith.constant 0 : index
      %c0_37 = arith.constant 0 : index
      %c0_38 = arith.constant 0 : index
      %29 = vector.load %arg7[%c0_36, %c0_37, %c0_38] : memref<1x64x128xf32, #tpu.memory_space<vmem>>, vector<1x64x128xf32>
      tpu.vector_store %arg7[%c0_36, %c0_37, %c0_38], %28 {strides = array<i32>} : memref<1x64x128xf32, #tpu.memory_space<vmem>>, vector<1x64x128xf32>,
    } else {
    }
    %c0_i32_1 = arith.constant 0 : i32
    %c128_i32 = arith.constant 128 : i32
    %3 = arith.muli %c0_i32_1, %c128_i32 : i32
    %4 = tpu.assume_multiple %3, 128 : i32
    %c0 = arith.constant 0 : index
    %c0_2 = arith.constant 0 : index
    %5 = arith.index_cast %4 : i32 to index
    %6 = vector.load %arg2[%c0, %c0_2, %5] : memref<1x64x256xf32, #tpu.memory_space<vmem>>, vector<1x64x128xf32>
    %c0_3 = arith.constant 0 : index
    %c0_4 = arith.constant 0 : index
    %c0_5 = arith.constant 0 : index
    %7 = vector.load %arg6[%c0_3, %c0_4, %c0_5] : memref<1x64x128xf32, #tpu.memory_space<vmem>>, vector<1x64x128xf32>
    %8 = arith.maximumf %7, %6 : vector<1x64x128xf32>
    %c0_6 = arith.constant 0 : index
    %c0_7 = arith.constant 0 : index
    %c0_8 = arith.constant 0 : index
    %9 = vector.load %arg6[%c0_6, %c0_7, %c0_8] : memref<1x64x128xf32, #tpu.memory_space<vmem>>, vector<1x64x128xf32>
    tpu.vector_store %arg6[%c0_6, %c0_7, %c0_8], %8 {strides = array<i32>} : memref<1x64x128xf32, #tpu.memory_space<vmem>>, vector<1x64x128xf32>,
    %c0_9 = arith.constant 0 : index
    %c0_10 = arith.constant 0 : index
    %c0_11 = arith.constant 0 : index
    %10 = vector.load %arg7[%c0_9, %c0_10, %c0_11] : memref<1x64x128xf32, #tpu.memory_space<vmem>>, vector<1x64x128xf32>
    %11 = arith.addf %10, %6 : vector<1x64x128xf32>
    %c0_12 = arith.constant 0 : index
    %c0_13 = arith.constant 0 : index
    %c0_14 = arith.constant 0 : index
    %12 = vector.load %arg7[%c0_12, %c0_13, %c0_14] : memref<1x64x128xf32, #tpu.memory_space<vmem>>, vector<1x64x128xf32>
    tpu.vector_store %arg7[%c0_12, %c0_13, %c0_14], %11 {strides = array<i32>} : memref<1x64x128xf32, #tpu.memory_space<vmem>>, vector<1x64x128xf32>,
    %c1_i32 = arith.constant 1 : i32
    %c128_i32_15 = arith.constant 128 : i32
    %13 = arith.muli %c1_i32, %c128_i32_15 : i32
    %14 = tpu.assume_multiple %13, 128 : i32
    %c0_16 = arith.constant 0 : index
    %c0_17 = arith.constant 0 : index
    %15 = arith.index_cast %14 : i32 to index
    %16 = vector.load %arg2[%c0_16, %c0_17, %15] : memref<1x64x256xf32, #tpu.memory_space<vmem>>, vector<1x64x128xf32>
    %c0_18 = arith.constant 0 : index
    %c0_19 = arith.constant 0 : index
    %c0_20 = arith.constant 0 : index
    %17 = vector.load %arg6[%c0_18, %c0_19, %c0_20] : memref<1x64x128xf32, #tpu.memory_space<vmem>>, vector<1x64x128xf32>
    %18 = arith.maximumf %17, %16 : vector<1x64x128xf32>
    %c0_21 = arith.constant 0 : index
    %c0_22 = arith.constant 0 : index
    %c0_23 = arith.constant 0 : index
    %19 = vector.load %arg6[%c0_21, %c0_22, %c0_23] : memref<1x64x128xf32, #tpu.memory_space<vmem>>, vector<1x64x128xf32>
    tpu.vector_store %arg6[%c0_21, %c0_22, %c0_23], %18 {strides = array<i32>} : memref<1x64x128xf32, #tpu.memory_space<vmem>>, vector<1x64x128xf32>,
    %c0_24 = arith.constant 0 : index
    %c0_25 = arith.constant 0 : index
    %c0_26 = arith.constant 0 : index
    %20 = vector.load %arg7[%c0_24, %c0_25, %c0_26] : memref<1x64x128xf32, #tpu.memory_space<vmem>>, vector<1x64x128xf32>
    %21 = arith.addf %20, %16 : vector<1x64x128xf32>
    %c0_27 = arith.constant 0 : index
    %c0_28 = arith.constant 0 : index
    %c0_29 = arith.constant 0 : index
    %22 = vector.load %arg7[%c0_27, %c0_28, %c0_29] : memref<1x64x128xf32, #tpu.memory_space<vmem>>, vector<1x64x128xf32>
    tpu.vector_store %arg7[%c0_27, %c0_28, %c0_29], %21 {strides = array<i32>} : memref<1x64x128xf32, #tpu.memory_space<vmem>>, vector<1x64x128xf32>,
    %c2_i32 = arith.constant 2 : i32
    %c0_i32_30 = arith.constant 0 : i32
    %23 = arith.cmpi eq, %arg1, %c0_i32_30 : i32
    %24 = arith.extui %23 : i1 to i32
    %c0_i32_31 = arith.constant 0 : i32
    %25 = arith.cmpi ne, %24, %c0_i32_31 : i32
    scf.if %25 {
      %c0_32 = arith.constant 0 : index
      %c0_33 = arith.constant 0 : index
      %c0_34 = arith.constant 0 : index
      %26 = vector.load %arg6[%c0_32, %c0_33, %c0_34] : memref<1x64x128xf32, #tpu.memory_space<vmem>>, vector<1x64x128xf32>
      %cst = arith.constant dense<0xFF800000> : vector<1x64xf32>
      %27 = vector.multi_reduction <maximumf>, %26, %cst [2] : vector<1x64x128xf32> to vector<1x64xf32>
      %c0_35 = arith.constant 0 : index
      %c0_36 = arith.constant 0 : index
      %c0_37 = arith.constant 0 : index
      %28 = vector.load %arg7[%c0_35, %c0_36, %c0_37] : memref<1x64x128xf32, #tpu.memory_space<vmem>>, vector<1x64x128xf32>
      %cst_38 = arith.constant dense<0.000000e+00> : vector<1x64xf32>
      %29 = vector.multi_reduction <add>, %28, %cst_38 [2] : vector<1x64x128xf32> to vector<1x64xf32>
      %cst_39 = arith.constant 3.906250e-03 : f32
      %30 = vector.broadcast %cst_39 : f32 to vector<1x64xf32>
      %31 = arith.mulf %29, %30 : vector<1x64xf32>
      %c0_40 = arith.constant 0 : index
      %c0_41 = arith.constant 0 : index
      %32 = vector.load %arg3[%c0_40, %c0_41] : memref<4x64xf32, #tpu.memory_space<vmem>>, vector<4x64xf32>
      %c0_42 = arith.constant 0 : index
      %c0_43 = arith.constant 0 : index
      %33 = vector.load %arg4[%c0_42, %c0_43] : memref<64x4xf32, #tpu.memory_space<vmem>>, vector<64x4xf32>
      %cst_44 = arith.constant dense<0.000000e+00> : vector<1x4xf32>
      %34 = tpu.matmul %27, %32, %cst_44 {dimension_numbers = #tpu.dot_dimension_numbers<[1], [1], [0], [0], [0, 0, 1, 0], [], []>} : vector<1x64xf32>, vector<4x64xf32>, vector<1x4xf32> -> vector<1x4xf32>
      %cst_45 = arith.constant 3.000000e+00 : f32
      %35 = vector.broadcast %cst_45 : f32 to vector<1x4xf32>
      %36 = arith.addf %34, %35 : vector<1x4xf32>
      %cst_46 = arith.constant 0.000000e+00 : f32
      %cst_47 = arith.constant 6.000000e+00 : f32
      %37 = vector.broadcast %cst_46 : f32 to vector<1x4xf32>
      %38 = arith.maximumf %37, %36 : vector<1x4xf32>
      %39 = vector.broadcast %cst_47 : f32 to vector<1x4xf32>
      %40 = arith.minimumf %39, %38 : vector<1x4xf32>
      %cst_48 = arith.constant 0.166666672 : f32
      %41 = vector.broadcast %cst_48 : f32 to vector<1x4xf32>
      %42 = arith.mulf %40, %41 : vector<1x4xf32>
      %43 = arith.mulf %34, %42 : vector<1x4xf32>
      %cst_49 = arith.constant dense<0.000000e+00> : vector<1x64xf32>
      %44 = tpu.matmul %43, %33, %cst_49 {dimension_numbers = #tpu.dot_dimension_numbers<[1], [1], [0], [0], [0, 0, 1, 0], [], []>} : vector<1x4xf32>, vector<64x4xf32>, vector<1x64xf32> -> vector<1x64xf32>
      %cst_50 = arith.constant dense<0.000000e+00> : vector<1x4xf32>
      %45 = tpu.matmul %31, %32, %cst_50 {dimension_numbers = #tpu.dot_dimension_numbers<[1], [1], [0], [0], [0, 0, 1, 0], [], []>} : vector<1x64xf32>, vector<4x64xf32>, vector<1x4xf32> -> vector<1x4xf32>
      %cst_51 = arith.constant 3.000000e+00 : f32
      %46 = vector.broadcast %cst_51 : f32 to vector<1x4xf32>
      %47 = arith.addf %45, %46 : vector<1x4xf32>
      %cst_52 = arith.constant 0.000000e+00 : f32
      %cst_53 = arith.constant 6.000000e+00 : f32
      %48 = vector.broadcast %cst_52 : f32 to vector<1x4xf32>
      %49 = arith.maximumf %48, %47 : vector<1x4xf32>
      %50 = vector.broadcast %cst_53 : f32 to vector<1x4xf32>
      %51 = arith.minimumf %50, %49 : vector<1x4xf32>
      %cst_54 = arith.constant 0.166666672 : f32
      %52 = vector.broadcast %cst_54 : f32 to vector<1x4xf32>
      %53 = arith.mulf %51, %52 : vector<1x4xf32>
      %54 = arith.mulf %45, %53 : vector<1x4xf32>
      %cst_55 = arith.constant dense<0.000000e+00> : vector<1x64xf32>
      %55 = tpu.matmul %54, %33, %cst_55 {dimension_numbers = #tpu.dot_dimension_numbers<[1], [1], [0], [0], [0, 0, 1, 0], [], []>} : vector<1x4xf32>, vector<64x4xf32>, vector<1x64xf32> -> vector<1x64xf32>
      %56 = arith.addf %44, %55 : vector<1x64xf32>
      %cst_56 = arith.constant 0.000000e+00 : f32
      %57 = vector.broadcast %cst_56 : f32 to vector<1x64xf32>
      %58 = arith.subf %57, %56 : vector<1x64xf32>
      %59 = math.exp %58 : vector<1x64xf32>
      %cst_57 = arith.constant 1.000000e+00 : f32
      %60 = vector.broadcast %cst_57 : f32 to vector<1x64xf32>
      %61 = arith.addf %60, %59 : vector<1x64xf32>
      %cst_58 = arith.constant 1.000000e+00 : f32
      %62 = vector.broadcast %cst_58 : f32 to vector<1x64xf32>
      %63 = arith.divf %62, %61 : vector<1x64xf32>
      %c0_59 = arith.constant 0 : index
      %c0_60 = arith.constant 0 : index
      %c0_61 = arith.constant 0 : index
      %64 = vector.load %arg5[%c0_59, %c0_60, %c0_61] : memref<1x1x64xf32, #tpu.memory_space<vmem>>, vector<1x1x64xf32>
      %65 = vector.shape_cast %64 : vector<1x1x64xf32> to vector<1x64xf32>
      %66 = vector.shape_cast %63 : vector<1x64xf32> to vector<1x1x64xf32>
      tpu.vector_store %arg5[%c0_59, %c0_60, %c0_61], %66 {strides = array<i32>} : memref<1x1x64xf32, #tpu.memory_space<vmem>>, vector<1x1x64xf32>,
    } else {
    }
    return
  }
  func.func @transform_0(%arg0: i32, %arg1: i32) -> (i32, i32, i32) {
    %c0_i32 = arith.constant 0 : i32
    %c0_i32_0 = arith.constant 0 : i32
    return %arg0, %c0_i32, %arg1 : i32, i32, i32
  }
  func.func @transform_1(%arg0: i32, %arg1: i32) -> (i32, i32) {
    %c0_i32 = arith.constant 0 : i32
    %c0_i32_0 = arith.constant 0 : i32
    %c0_i32_1 = arith.constant 0 : i32
    return %c0_i32, %c0_i32_0 : i32, i32
  }
  func.func @transform_2(%arg0: i32, %arg1: i32) -> (i32, i32) {
    %c0_i32 = arith.constant 0 : i32
    %c0_i32_0 = arith.constant 0 : i32
    %c0_i32_1 = arith.constant 0 : i32
    return %c0_i32, %c0_i32_0 : i32, i32
  }
  func.func @transform_3(%arg0: i32, %arg1: i32) -> (i32, i32, i32) {
    %c0_i32 = arith.constant 0 : i32
    %c0_i32_0 = arith.constant 0 : i32
    %c0_i32_1 = arith.constant 0 : i32
    return %arg0, %c0_i32, %c0_i32_0 : i32, i32, i32
  }
}

</mosaic_0001>

<bundles_post_ra>
// kernel: channel_attention_forward.1
= control target key start
LH: loop header
LB: loop body
LE: loop exit
PB: predicated region body
PF: predicated region fallthrough
CT: control target
= control target key end

     0   :  { %8 = vsyncpa [#allocation5], 0  ;;  %s1411_s0 = inlined_call_operand.vmem [shape: f32[2,64,256], index: 0, kind: input, shape index: {}]   ;;  %s1412_s1 = inlined_call_operand.vmem [shape: f32[4,64], index: 1, kind: input, shape index: {}]   ;;  %s1413_s2 = inlined_call_operand.vmem [shape: f32[64,4], index: 2, kind: input, shape index: {}]   ;;  %s1414_s3 = inlined_call_operand.hbm [shape: f32[2,1,64], index: 3, kind: output, shape index: {}]  }
   0x1   :  { %10 = vsyncpa [#allocation5 + $0x1], 0  ;;  %s1199_s12 = smov 0   ;;  %s1201_s13 = smov 0  }
   0x2   :  { %s1203_s14 = smov 0   ;;  %s1205_s15 = smov 0  }
   0x3   :  { %s1207_s16 = smov 0   ;;  %s1209_s17 = smov 0  }
   0x4 LB: > { %s926_s18 = sadd.s32 4294967295, %s1174_s17   ;;  %s927_s19 = sadd.s32 4294967294, %s1174_s17   ;;  %s1174_s17 = sphi %s1209_s17, %s16_s17   ;;  %s1170_s16 = sphi %s1207_s16, %s1421_s16   ;;  %s1166_s15 = sphi %s1205_s15, %s1420_s15   ;;  %s1162_s14 = sphi %s1203_s14, %s1419_s14   ;;  %s1158_s13 = sphi %s1201_s13, %s1418_s13   ;;  %s1154_s12 = sphi %s1199_s12, %s1417_s12  }
   0x5   : > { %s28_s20 = sadd.s32 1, %s1170_s16  ;;  %s105_s21 = sadd.s32 1, %s1162_s14 }
   0x6   : > { %p30_p0 = scmp.ge.s32.totalorder %s28_s20, 2  ;;  %p115_p1 = scmp.ne.s32.totalorder %s1162_s14, %s1158_s13 }
   0x7   : > { %p116_p2 = scmp.eq.s32.totalorder %s926_s18, 1  ;;  %p121_p3 = scmp.ne.s32.totalorder %s1158_s13, %s1154_s12 }
   0x8   : > { %s1423_s20 = smov (%p30_p0, %s28_s20), 0  ;;  %p122_p5 = scmp.eq.s32.totalorder %s927_s19, 1 }
   0x9   : > { %p1239_p4 = por %p116_p2, %p115_p1  ;;  %s102_s23 = ssub.s32 %s1170_s16, %s1423_s20 }
   0xa   : > { %p930_p6 = scmp.ge.s32.totalorder %s1174_s17, 1  ;;  %p103_p7 = scmp.eq.s32.totalorder %s102_s23, 0 }
   0xb   : > { %p1246_p8 = por %p122_p5, %p121_p3  ;;  %p159_p9 = scmp.lt.s32.totalorder %s1174_s17, 3 }
   0xc   : > { %s1252_s25 = scalar_select %p103_p7, %s1162_s14, %s105_s21  }
   0xd   : > { %p160_p10 = pnand %p930_p6, %p159_p9 }
   0xe   : > { %p187_p11 = scmp.lt.s32.totalorder (!%p160_p10), %s1166_s15, 1  ;;  %s184_s5 = sand.u32 (!%p160_p10), 1, %s1158_s13  }
   0xf   : > { %163 = sbr.rel (%p160_p10) target bundleno = 643 (0x283), region = 32  ;;  %s963_s6 = sshll.u32 (!%p160_p10), %s1166_s15, 4 }
  0x10   : > { %s185_s7 = scalar_lea.vmem (!%p160_p10), [#allocation4], %s184_s5  ;;  %s1371_s11 = scalar_lea.hbm (!%p160_p10), %s1414_s3, %s963_s6 }
  0x11   : > { %s857_s8 = sshll.u32 (!%p160_p10), %s185_s7, 4  ;;  %s845_s18 = scalar_lea.sflag (!%p160_p10), [#allocation5], %s184_s5  ;;  %s858_s8 = int_to_ptr.vmem [resolvable:$true] %s857_s8 }
  0x12   : > { %s1098_s19 = scalar_lea.vmem (!%p160_p10), %s858_s8, 16  ;;  %s1178_s21 = smov (!%p160_p10), [#allocation4]  }
  0x13   : > { %p1099_p12 = scmp.ne.s32.totalorder (!%p160_p10), %s858_s8, %s1098_s19  ;;  %s1102_s23 = sshll.u32 (!%p160_p10), %s1178_s21, 4  ;;  %s1103_s23 = int_to_ptr.vmem [resolvable:$false] %s1102_s23 }
  0x14   : > { %s188_s26 = scalar_select %p187_p11, %s1166_s15, 1  ;;  %v1176_v32 = vmov 0.0   ;;  %v388_v33 = vld [vmem:[%s1412_s1] sm:$0xf]  ;;  %vm460_vm0 = vcmask 523264   ;;  %vm1177_vm1 = vmmov 0   ;;  %v405_v36 = vlaneseq }
  0x15   : > { %994 = vmatprep.subr.mxu1 %v1176_v32  ;;  %989 = vmatprep.subr.mxu0 %v1176_v32  ;;  %vm416_vm2 = vcmask 130112   ;;  %vm423_vm3 = vcmask 195712   ;;  %vm430_vm4 = vcmask 261312   ;;  %vm437_vm5 = vcmask 326912   ;;  %p1100_p13 = pnand %p1099_p12, %p1239_p4  ;;  %s1104_s15 = scalar_lea.vmem %s1103_s23, 32 }
  0x16   : > { %s966_s27 = sshll.u32 %s188_s26, 7  ;;  %995 = vmatpush3.xpose.msk.msra.mxu1 %vm460_vm0, %v388_v33  ;;  %990 = vmatpush3.xpose.msk.msra.mxu0 %vm460_vm0, %v388_v33  ;;  %v406_v39 = vand.u32 127, %v405_v36  ;;  %v408_v43 = vshrl.u32 %v405_v36, 7  ;;  %vm444_vm6 = vcmask 392512   ;;  %vm451_vm7 = vcmask 458112   ;;  %p1105_p1 = scmp.lt.s32.totalorder %s858_s8, %s1103_s23 }
  0x17   : > { %s1259_s30 = scalar_lea.vmem %s1411_s0, %s966_s27  ;;  %999 = vmatprep.subr.mxu0 %v1176_v32  ;;  %1018 = vmatprep.subr.mxu1 %v1176_v32  ;;  %vm458_vm8 = vcmask 523712   ;;  %vm665_vm9 = vcmask 31744   ;;  %vm842_vm10 = vcmask 516096   ;;  %p1101_p0 = pneg %p1100_p13 }
  0x18   : > { %v218_v0 = vld [vmem:[%s1259_s30 + $0x20] sm:$0xff]  ;;  %v935_v1 = vld [vmem:[%s1259_s30 + $0x28] sm:$0xff]  ;;  %v217_v5 = vld [vmem:[%s1259_s30 + $0x10] sm:$0xff]  ;;  %996 = vmatprep.mubr.msk.f32.mxu1 %vm1177_vm1, %v1176_v32  ;;  %991 = vmatprep.mubr.msk.f32.mxu0 %vm1177_vm1, %v1176_v32  ;;  %v411_v41 = vadd.s32 4294967288, %v406_v39  ;;  %v418_v45 = vadd.s32 4294967280, %v406_v39  ;;  %v425_v48 = vadd.s32 4294967272, %v406_v39  ;;  %v409_v51 = vsub.s32 %v406_v39, %v408_v43  ;;  %p1106_p2 = scmp.lt.s32.totalorder %s1104_s15, %s1098_s19 }
  0x19   : > { %v216_v2 = vld [vmem:[%s1259_s30] sm:$0xff]  ;;  %v315_v3 = vadd.f32 %v935_v1, %v218_v0  ;;  %v933_v4 = vld [vmem:[%s1259_s30 + $0x8] sm:$0xff]  ;;  %v934_v6 = vld [vmem:[%s1259_s30 + $0x18] sm:$0xff]  ;;  %v291_v17 = vmax.f32 %v218_v0, %v935_v1  ;;  %v432_v50 = vadd.s32 4294967264, %v406_v39  ;;  %v439_v53 = vadd.s32 4294967256, %v406_v39 }
  0x1a   : > { %v313_v7 = vadd.f32 %v933_v4, %v216_v2  ;;  %v289_v8 = vmax.f32 %v216_v2, %v933_v4  ;;  %v314_v9 = vadd.f32 %v934_v6, %v217_v5  ;;  %v219_v10 = vld [vmem:[%s1259_s30 + $0x30] sm:$0xff]  ;;  %v936_v11 = vld [vmem:[%s1259_s30 + $0x38] sm:$0xff]  ;;  %v290_v13 = vmax.f32 %v217_v5, %v934_v6  ;;  %v220_v14 = vld [vmem:[%s1259_s30 + $0x40] sm:$0xff]  ;;  %p1107_p3 = por %p1106_p2, %p1105_p1 }
  0x1b   : > { %368 = vadd.xlane.f32.xlu1 %v315_v3  ;;  %v316_v12 = vadd.f32 %v936_v11, %v219_v10  ;;  %v937_v15 = vld [vmem:[%s1259_s30 + $0x48] sm:$0xff]  ;;  %v221_v18 = vld [vmem:[%s1259_s30 + $0x50] sm:$0xff]  ;;  %v938_v19 = vld [vmem:[%s1259_s30 + $0x58] sm:$0xff]  ;;  %v292_v21 = vmax.f32 %v219_v10, %v936_v11  ;;  %v414_v46 = vsub.s32 %v411_v41, %v408_v43  ;;  %v446_v55 = vadd.s32 4294967248, %v406_v39 }
  0x1c   : > { %364 = vadd.xlane.f32.xlu0 %v313_v7  ;;  %v317_v16 = vadd.f32 %v937_v15, %v220_v14  ;;  %v318_v20 = vadd.f32 %v938_v19, %v221_v18  ;;  %v222_v22 = vld [vmem:[%s1259_s30 + $0x60] sm:$0xff]  ;;  %v939_v23 = vld [vmem:[%s1259_s30 + $0x68] sm:$0xff]  ;;  %v293_v25 = vmax.f32 %v220_v14, %v937_v15  ;;  %v223_v26 = vld [vmem:[%s1259_s30 + $0x70] sm:$0xff]  ;;  %v294_v29 = vmax.f32 %v221_v18, %v938_v19  ;;  %p1108_p5 = pnand %p1107_p3, %p1101_p0 }
  0x1d   : > { %v319_v24 = vadd.f32 %v939_v23, %v222_v22  ;;  %v940_v27 = vld [vmem:[%s1259_s30 + $0x78] sm:$0xff]  ;;  %v295_v31 = vmax.f32 %v222_v22, %v939_v23  ;;  %v421_v56 = vsub.s32 %v418_v45, %v408_v43  ;;  %v428_v58 = vsub.s32 %v425_v48, %v408_v43  ;;  %v394_v45 = vld [vmem:[%s1413_s2 + $0x28] sm:$0xff]  ;;  %v391_v48 = vld [vmem:[%s1413_s2 + $0x10] sm:$0xff] }
  0x1e   : > { %v320_v28 = vadd.f32 %v940_v27, %v223_v26  ;;  %v296_v30 = vmax.f32 %v223_v26, %v940_v27  ;;  %v435_v62 = vsub.s32 %v432_v50, %v408_v43  ;;  %v442_v1 = vsub.s32 %v439_v53, %v408_v43  ;;  %v389_v50 = vld [vmem:[%s1413_s2] sm:$0xff] }
  0x1f   : > { %340 = vmax.xlane.f32.xlu1 %v289_v8  ;;  %v453_v3 = vadd.s32 4294967240, %v406_v39  ;;  %v449_v4 = vsub.s32 %v446_v55, %v408_v43 }
  0x20   : > { %366 = vadd.xlane.f32.xlu0 %v314_v9 }
  0x21   : > { %v456_v14 = vsub.s32 %v453_v3, %v408_v43 }
  0x23   : > { %370 = vadd.xlane.f32.xlu1 %v316_v12 }
  0x24   : > { %342 = vmax.xlane.f32.xlu0 %v290_v13 }
  0x27   : > { %372 = vadd.xlane.f32.xlu1 %v317_v16 }
  0x28   : > { %344 = vmax.xlane.f32.xlu0 %v291_v17 }
  0x2b   : > { %374 = vadd.xlane.f32.xlu1 %v318_v20 }
  0x2c   : > { %346 = vmax.xlane.f32.xlu0 %v292_v21 }
  0x2f   : > { %376 = vadd.xlane.f32.xlu1 %v319_v24 }
  0x30   : > { %348 = vmax.xlane.f32.xlu0 %v293_v25 }
  0x33   : > { %378 = vadd.xlane.f32.xlu1 %v320_v28 }
  0x34   : > { %350 = vmax.xlane.f32.xlu0 %v294_v29 }
  0x37   : > { %354 = vmax.xlane.f32.xlu1 %v296_v30 }
  0x38   : > { %352 = vmax.xlane.f32.xlu0 %v295_v31 }
  0xa4   : > { %v369_v34 = vpop.xlane.xlu1 %368 }
  0xa5   : > { %v365_v35 = vpop.xlane.xlu0 %364  ;;  %v382_v61 = vmul.f32 0.00390625, %v369_v34 }
  0xa6   : > { %v380_v52 = vmul.f32 0.00390625, %v365_v35 }
  0xa7   : > { %v561_v10 = vrot.slane %v382_v61, %v421_v56 }
  0xa8   : > { %v341_v37 = vpop.xlane.xlu1 %340  ;;  %v552_v0 = vrot.slane %v380_v52, %v409_v51 }
  0xa9   : > { %v367_v38 = vpop.xlane.xlu0 %366  ;;  %v410_v19 = vrot.slane %v341_v37, %v409_v51 }
  0xaa   : > { %v381_v47 = vmul.f32 0.00390625, %v367_v38 }
  0xac   : > { %v371_v40 = vpop.xlane.xlu1 %370  ;;  %v556_v57 = vrot.slane %v381_v47, %v414_v46  ;;  %v392_v47 = vld [vmem:[%s1413_s2 + $0x18] sm:$0xff] }
  0xad   : > { %v343_v42 = vpop.xlane.xlu0 %342  ;;  %v383_v59 = vmul.f32 0.00390625, %v371_v40  ;;  %v396_v40 = vld [vmem:[%s1413_s2 + $0x38] sm:$0xff] }
  0xae   : > { %v557_v6 = vsel %vm416_vm2, %v556_v57, %v552_v0  ;;  %v415_v12 = vrot.slane %v343_v42, %v414_v46  ;;  %v393_v46 = vld [vmem:[%s1413_s2 + $0x20] sm:$0xff] }
  0xaf   : > { %v566_v7 = vrot.slane %v383_v59, %v428_v58  ;;  %v562_v15 = vsel %vm423_vm3, %v561_v10, %v557_v6 }
  0xb0   : > { %v373_v44 = vpop.xlane.xlu1 %372  ;;  %v417_v26 = vsel %vm416_vm2, %v415_v12, %v410_v19 }
  0xb1   : > { %v345_v49 = vpop.xlane.xlu0 %344  ;;  %v384_v63 = vmul.f32 0.00390625, %v373_v44  ;;  %v567_v20 = vsel %vm430_vm4, %v566_v7, %v562_v15  ;;  %v395_v44 = vld [vmem:[%s1413_s2 + $0x30] sm:$0xff] }
  0xb2   : > { %v422_v16 = vrot.slane %v345_v49, %v421_v56  ;;  %v390_v49 = vld [vmem:[%s1413_s2 + $0x8] sm:$0xff] }
  0xb3   : > { %v571_v11 = vrot.slane %v384_v63, %v435_v62 }
  0xb4   : > { %v375_v54 = vpop.xlane.xlu1 %374  ;;  %v424_v30 = vsel %vm423_vm3, %v422_v16, %v417_v26 }
  0xb5   : > { %v347_v60 = vpop.xlane.xlu0 %346  ;;  %v385_v2 = vmul.f32 0.00390625, %v375_v54  ;;  %v572_v24 = vsel %vm437_vm5, %v571_v11, %v567_v20 }
  0xb6   : > { %v429_v21 = vrot.slane %v347_v60, %v428_v58 }
  0xb7   : > { %v576_v13 = vrot.slane %v385_v2, %v442_v1 }
  0xb8   : > { %v377_v5 = vpop.xlane.xlu1 %376  ;;  %v431_v34 = vsel %vm430_vm4, %v429_v21, %v424_v30 }
  0xb9   : > { %v349_v8 = vpop.xlane.xlu0 %348  ;;  %v386_v9 = vmul.f32 0.00390625, %v377_v5  ;;  %v577_v27 = vsel %vm444_vm6, %v576_v13, %v572_v24 }
  0xba   : > { %v436_v25 = vrot.slane %v349_v8, %v435_v62 }
  0xbb   : > { %v581_v17 = vrot.slane %v386_v9, %v449_v4 }
  0xbc   : > { %v379_v18 = vpop.xlane.xlu1 %378  ;;  %v438_v38 = vsel %vm437_vm5, %v436_v25, %v431_v34 }
  0xbd   : > { %v351_v22 = vpop.xlane.xlu0 %350  ;;  %v387_v23 = vmul.f32 0.00390625, %v379_v18  ;;  %v582_v33 = vsel %vm451_vm7, %v581_v17, %v577_v27 }
  0xbe   : > { %v443_v28 = vrot.slane %v351_v22, %v442_v1 }
  0xbf   : > { %v586_v29 = vrot.slane %v387_v23, %v456_v14 }
  0xc0   : > { %v355_v31 = vpop.xlane.xlu1 %354  ;;  %v445_v41 = vsel %vm444_vm6, %v443_v28, %v438_v38 }
  0xc1   : > { %v353_v35 = vpop.xlane.xlu0 %352  ;;  %v457_v36 = vrot.slane %v355_v31, %v456_v14  ;;  %v587_v37 = vsel %vm458_vm8, %v586_v29, %v582_v33 }
  0xc2   : > { %v450_v39 = vrot.slane %v353_v35, %v449_v4  ;;  %997 = vmatmul.mubr.msk.f32.vlgmr.msra.gmra.mxu1 %vm460_vm0, %v587_v37 }
  0xc3   : > { %1019 = vmatpush3.xpose.msk.msra.mxu1 %vm665_vm9, %v396_v40  ;;  %1034 = vmatprep.mubr.msk.f32.mxu1 %vm1177_vm1, %v1176_v32 }
  0xc4   : > { %v452_v42 = vsel %vm451_vm7, %v450_v39, %v445_v41  ;;  %1020 = vmatprep.subr.mxu1 %v1176_v32 }
  0xc5   : > { %v459_v43 = vsel %vm458_vm8, %v457_v36, %v452_v42 }
  0xc6   : > { %992 = vmatmul.mubr.msk.f32.vlgmr.msra.gmra.mxu0 %vm460_vm0, %v459_v43 }
  0xc7   : > { %1000 = vmatpush3.xpose.msk.msra.mxu0 %vm665_vm9, %v396_v40  ;;  %1021 = vmatpush3.xpose.msk.msra.mxu1 %vm665_vm9, %v395_v44 }
  0xc8   : > { %1001 = vmatprep.subr.mxu0 %v1176_v32  ;;  %1022 = vmatprep.subr.mxu1 %v1176_v32 }
  0xc9   : > { %1015 = vmatprep.mubr.msk.f32.mxu0 %vm1177_vm1, %v1176_v32 }
  0xcb   : > { %1002 = vmatpush3.xpose.msk.msra.mxu0 %vm665_vm9, %v395_v44  ;;  %1023 = vmatpush3.xpose.msk.msra.mxu1 %vm665_vm9, %v394_v45 }
  0xcc   : > { %1003 = vmatprep.subr.mxu0 %v1176_v32  ;;  %1024 = vmatprep.subr.mxu1 %v1176_v32 }
  0xcf   : > { %1004 = vmatpush3.xpose.msk.msra.mxu0 %vm665_vm9, %v394_v45  ;;  %1025 = vmatpush3.xpose.msk.msra.mxu1 %vm665_vm9, %v393_v46 }
  0xd0   : > { %1005 = vmatprep.subr.mxu0 %v1176_v32  ;;  %1026 = vmatprep.subr.mxu1 %v1176_v32 }
  0xd3   : > { %1006 = vmatpush3.xpose.msk.msra.mxu0 %vm665_vm9, %v393_v46  ;;  %1027 = vmatpush3.xpose.msk.msra.mxu1 %vm665_vm9, %v392_v47 }
  0xd4   : > { %1007 = vmatprep.subr.mxu0 %v1176_v32  ;;  %1028 = vmatprep.subr.mxu1 %v1176_v32 }
  0xd7   : > { %1008 = vmatpush3.xpose.msk.msra.mxu0 %vm665_vm9, %v392_v47  ;;  %1029 = vmatpush3.xpose.msk.msra.mxu1 %vm665_vm9, %v391_v48 }
  0xd8   : > { %1009 = vmatprep.subr.mxu0 %v1176_v32  ;;  %1030 = vmatprep.subr.mxu1 %v1176_v32 }
  0xdb   : > { %1010 = vmatpush3.xpose.msk.msra.mxu0 %vm665_vm9, %v391_v48  ;;  %1031 = vmatpush3.xpose.msk.msra.mxu1 %vm665_vm9, %v390_v49 }
  0xdc   : > { %1011 = vmatprep.subr.mxu0 %v1176_v32  ;;  %1032 = vmatprep.subr.mxu1 %v1176_v32 }
  0xdf   : > { %1012 = vmatpush3.xpose.msk.msra.mxu0 %vm665_vm9, %v390_v49  ;;  %1033 = vmatpush3.xpose.msk.msra.mxu1 %vm665_vm9, %v389_v50 }
  0xe0   : > { %1013 = vmatprep.subr.mxu0 %v1176_v32 }
  0xe3   : > { %1014 = vmatpush3.xpose.msk.msra.mxu0 %vm665_vm9, %v389_v50 }
 0x182   : > { %v656_v51 = vpop.f32.mrf.mxu1 }
 0x183   : > { %v660_v52 = vadd.f32 3.0, %v656_v51 }
 0x184   : > { %v998_v53 = vpop.f32.mrf.mxu1 }
 0x185   : > { %v661_v54 = vmax.f32 %v660_v52, 0.0 }
 0x186   : > { %v532_v55 = vpop.f32.mrf.mxu0 }
 0x187   : > { %v662_v56 = vmin.f32 %v661_v54, 6.0  ;;  %v536_v57 = vadd.f32 3.0, %v532_v55 }
 0x188   : > { %v993_v58 = vpop.f32.mrf.mxu0 }
 0x189   : > { %v663_v59 = vmul.f32 0.16666667, %v662_v56  ;;  %v537_v60 = vmax.f32 %v536_v57, 0.0 }
 0x18b   : > { %v664_v61 = vmul.f32 %v663_v59, %v656_v51  ;;  %v538_v32 = vmin.f32 %v537_v60, 6.0 }
 0x18d   : > { %v539_v62 = vmul.f32 0.16666667, %v538_v32  ;;  %1016 = vmatmul.mubr.msk.f32.vlgmr.msra.gmra.mxu0 %vm665_vm9, %v664_v61 }
 0x18f   : > { %v540_v63 = vmul.f32 %v539_v62, %v532_v55 }
 0x191   : > { %1035 = vmatmul.mubr.msk.f32.vlgmr.msra.gmra.mxu1 %vm665_vm9, %v540_v63 }
 0x24d   : > { %v759_v0 = vpop.f32.mrf.mxu0 }
 0x24f   : > { %v1017_v1 = vpop.f32.mrf.mxu0 }
 0x251   : > { %v832_v2 = vpop.f32.mrf.mxu1 }
 0x252   : > { %v833_v3 = vadd.f32 %v832_v2, %v759_v0 }
 0x253   : > { %v1036_v4 = vpop.f32.mrf.mxu1 }
 0x254   : > { %v836_v5 = vsub.f32 0.0, %v833_v3 }
 0x256   : > { %v837_v6 = vmul.f32 1.442695, %v836_v5 }
 0x258   : > { %1094 = vpow2.f32 %v837_v6 }
 0x265   : > { %v1095_v7 = vpop.eup %1094 }
 0x266   : > { %v839_v8 = vadd.f32 1.0, %v1095_v7 }
 0x268   : > { %1096 = vrcp.f32 %v839_v8 }
 0x275   : > { %v1097_v9 = vpop.eup %1096 }
 0x276   : > { %843 = vst.msk [vmem:[%s185_s7] sm:$0x1] %vm842_vm10, %v1097_v9 }
 0x277   : > { %1111 = shalt.err (!%p1108_p5)
}
 0x278   : > { %s1112_s26 = scalar_lea.hbm %s1371_s11, 16  ;;  %s1116_s29 = scalar_lea.hbm %s1414_s3, 32 }
 0x279   : > { %p1113_p6 = scmp.ne.s32.totalorder %s1371_s11, %s1112_s26  ;;  %p1117_p10 = scmp.lt.s32.totalorder %s1371_s11, %s1414_s3 }
 0x27a   : > { %p1118_p11 = scmp.lt.s32.totalorder %s1116_s29, %s1112_s26 }
 0x27b   : > { %p1114_p7 = pnand %p1113_p6, %p1239_p4 }
 0x27c   : > { %p1119_p12 = por %p1118_p11, %p1117_p10 }
 0x27d   : > { %p1115_p9 = pneg %p1114_p7 }
 0x27f   : > { %p1120_p13 = pnand %p1119_p12, %p1115_p9 }
 0x281   : > { %1123 = shalt.err (!%p1120_p13)
}
 0x282   : > { %1037 = dma.vmem_to_hbm [thread:$0]  (%p1239_p4), %s858_s8, 16, %s1371_s11, %s845_s18  }
 0x283 PF: > { %p1043_p0 = scmp.ge.s32.totalorder %s1174_s17, 2  ;;  %s869_s5 = sand.u32 1, %s1154_s12  }
 0x284   : > { %s870_s6 = scalar_lea.sflag [#allocation5], %s869_s5 }
 0x285   : > { %p1040_p1 = pnand %p1043_p0, %p1246_p8 }
 0x287   : > { %p1041_p2 = pneg %p1040_p1 }
 0x289   : > { %1149 = dma.done.wait (%p1041_p2), %s870_s6, 16  }
 0x28a   : > { %1151 = vsyncadd (%p1041_p2), %s870_s6, 4294967280  ;;  %s16_s17 = sadd.s32 1, %s1174_s17   ;;  %s1417_s12 = smov %s1158_s13 }
 0x28b   : > { %p13_p3 = scmp.ge.s32.totalorder %s16_s17, 4   ;;  %s1418_s13 = smov %s1162_s14 }
 0x28c   : > { %s1419_s14 = smov %s1252_s25  ;;  %s1420_s15 = smov %s1170_s16 }
 0x28d   : > { %s1421_s16 = smov %s1423_s20  ;;  %15 = sbr.rel (!%p13_p3) target bundleno = 4 (0x4), region = 76 }
 0x292   :  { %874 = vsyncpa [#allocation5], 1 }
 0x293   :  { %876 = vsyncpa [#allocation5 + $0x1], 1 }

</bundles_post_ra>
